<compile_context>
chip_gen: v7x
topology: tpu7x:2x2x1
jax: 0.10.0
libtpu: 0.0.40
codegen_flags: <defaults>
</compile_context>

<pallas_src>
import functools

import jax
import jax.numpy as jnp
from jax.experimental import pallas as pl
from jax.experimental.pallas import tpu as pltpu

LANE = 128    # lane padding target (output/feature dims)
SUBLANE = 8   # sublane padding target (batch dim)


def _round_up(x, m):
    return ((x + m - 1) // m) * m


def _pad_to(x, shape):
    return jnp.pad(x, [(0, t - s) for s, t in zip(x.shape, shape)])


# ---------------------------------------------------------------------------
# Fused Pallas kernel: 3 x (noisy-linear [+ ReLU]) in one body.
#   x_ref    : (bp, in_p)        padded input batch
#   ein1_ref : (1, in_p)         eps_in of layer 1 (row vector)
#   w*_ref   : (2, in_p, out_p)  stacked [mu_w^T ; sigma_w^T], zero padded
#   v*_ref   : (8, out_p)        rows = [eps_out, mu_b, sigma_b,
#                                        eps_in(next layer), 0, 0, 0, 0]
# ---------------------------------------------------------------------------
def dqn_fused_kernel(x_ref, ein1_ref, w1_ref, v1_ref, w2_ref, v2_ref,
                     w3_ref, v3_ref, o_ref):
    def dot(a, b):
        return jax.lax.dot_general(
            a, b,
            dimension_numbers=(((1,), (0,)), ((), ())),
            preferred_element_type=jnp.float32,
        )

    def noisy_layer(h, ein_row, w_ref, v_ref, apply_relu):
        mu_w = w_ref[0]            # (in_p, out_p)
        sg_w = w_ref[1]            # (in_p, out_p)
        eo = v_ref[0:1, :]         # (1, out_p)
        mu_b = v_ref[1:2, :]
        sg_b = v_ref[2:3, :]
        # y = h @ (sg*outer(ein,eo) + mu) + (sg_b*eo + mu_b), factored so that
        # no (in_p, out_p) noisy-W matrix is ever built on the VPU.
        y = dot(h, mu_w) + eo * dot(h * ein_row, sg_w) + (sg_b * eo + mu_b)
        return jnp.maximum(y, 0.0) if apply_relu else y

    h = x_ref[...]
    h = noisy_layer(h, ein1_ref[...], w1_ref, v1_ref, True)
    h = noisy_layer(h, v1_ref[3:4, :], w2_ref, v2_ref, True)   # eps_in(l2) rides in v1
    h = noisy_layer(h, v2_ref[3:4, :], w3_ref, v3_ref, False)  # eps_in(l3) rides in v2
    o_ref[...] = h.astype(o_ref.dtype)


# ---------------------------------------------------------------------------
# Parameter construction (mirrors FactorisedNoisyLayer.parameter_initialization)
# and per-call noise sampling (mirrors sample_noise / get_noise_tensor).
# ---------------------------------------------------------------------------
def make_noisy_layer_params(key, in_f, out_f, sigma=0.4):
    bound = in_f ** (-0.5)
    k_mu_w, k_mu_b = jax.random.split(key)
    mu_w = jax.random.uniform(k_mu_w, (out_f, in_f), jnp.float32, -bound, bound)
    sg_w = jnp.full((out_f, in_f), sigma * bound, jnp.float32)
    mu_b = jax.random.uniform(k_mu_b, (out_f,), jnp.float32, -bound, bound)
    sg_b = jnp.full((out_f,), sigma * bound, jnp.float32)
    return (mu_w, sg_w, mu_b, sg_b)


def sample_layer_noise(key, in_f, out_f):
    bound = in_f ** (-0.5)
    k_in, k_out = jax.random.split(key)

    def noise(k, n):
        u = jax.random.uniform(k, (n,), jnp.float32, -bound, bound)
        return jnp.sign(u) * jnp.sqrt(jnp.abs(u))

    return (noise(k_in, in_f), noise(k_out, out_f))


# ---------------------------------------------------------------------------
# ONE-TIME static prep (hoisted out of the per-step forward): transpose
# weights to (in, out), zero-pad to (8,128)-aligned shapes, stack mu/sigma so
# each layer's weights travel in a single DMA.
# ---------------------------------------------------------------------------
def prepare_dqn_params(params):
    prepped = []
    for (mu_w, sg_w, mu_b, sg_b) in params:
        out_f, in_f = mu_w.shape
        in_p = _round_up(in_f, LANE)
        out_p = _round_up(out_f, LANE)
        w_stack = jnp.stack([_pad_to(mu_w.T, (in_p, out_p)),
                             _pad_to(sg_w.T, (in_p, out_p))])   # (2, in_p, out_p)
        b_rows = jnp.stack([_pad_to(mu_b, (out_p,)),
                            _pad_to(sg_b, (out_p,))])           # (2, out_p)
        prepped.append((w_stack, b_rows))
    return tuple(prepped)


# ---------------------------------------------------------------------------
# Jitted forward: builds only the tiny per-call operands (padded x, noise/bias
# row packs), runs the single fused pallas_call, slices the true output.
# ---------------------------------------------------------------------------
@functools.partial(jax.jit, static_argnames=("n_actions",))
def dqn_forward(state, prepped, noise, *, n_actions):
    batch, _ = state.shape
    (w1, b1), (w2, b2), (w3, b3) = prepped
    in_p, f1_p = w1.shape[1], w1.shape[2]
    f2_p = w2.shape[2]
    out_p = w3.shape[2]
    bp = _round_up(batch, SUBLANE)

    (ein1, eout1), (ein2, eout2), (ein3, eout3) = noise

    x_p = _pad_to(state.astype(jnp.float32), (bp, in_p))
    ein1_row = _pad_to(ein1, (in_p,)).reshape(1, in_p)

    def vec_pack(eout, b_rows, ein_next, width):
        rows = [
            _pad_to(eout, (width,)).reshape(1, width),   # eps_out
            b_rows,                                      # mu_b ; sigma_b
            (_pad_to(ein_next, (width,)).reshape(1, width)
             if ein_next is not None
             else jnp.zeros((1, width), jnp.float32)),   # eps_in of next layer
            jnp.zeros((4, width), jnp.float32),
        ]
        return jnp.concatenate(rows, axis=0)             # (8, width)

    v1 = vec_pack(eout1, b1, ein2, f1_p)
    v2 = vec_pack(eout2, b2, ein3, f2_p)
    v3 = vec_pack(eout3, b3, None, out_p)

    in_arrays = (x_p, ein1_row, w1, v1, w2, v2, w3, v3)
    flops = 4 * bp * (in_p * f1_p + f1_p * f2_p + f2_p * out_p)
    bytes_accessed = sum(int(a.size) * 4 for a in in_arrays) + bp * out_p * 4

    vmem = pl.BlockSpec(memory_space=pltpu.MemorySpace.VMEM)
    out_padded = pl.pallas_call(
        dqn_fused_kernel,
        out_shape=jax.ShapeDtypeStruct((bp, out_p), jnp.float32),
        in_specs=[vmem] * len(in_arrays),
        out_specs=vmem,
        cost_estimate=pl.CostEstimate(flops=flops, transcendentals=0,
                                      bytes_accessed=bytes_accessed),
    )(*in_arrays)
    # Padded batch rows equal the bias chain (not zero) -> always slice here.
    return out_padded[:batch, :n_actions]


if __name__ == "__main__":
    # Shapes consistent with DQN(lr, input_dims=(8,), fc1=32, fc2=32, n_actions=4)
    batch = 2
    input_dim = 8
    fc1_dims = 32
    fc2_dims = 32
    n_actions = 4

    key = jax.random.PRNGKey(0)
    k_x, k1, k2, k3, kn1, kn2, kn3 = jax.random.split(key, 7)

    state = jax.random.normal(k_x, (batch, input_dim), jnp.float32)
    params = (
        make_noisy_layer_params(k1, input_dim, fc1_dims),
        make_noisy_layer_params(k2, fc1_dims, fc2_dims),
        make_noisy_layer_params(k3, fc2_dims, n_actions),
    )

    # One-time static prep (hoisted out of the per-step forward path).
    prepped = prepare_dqn_params(params)
    prepped = jax.tree_util.tree_map(jax.block_until_ready, prepped)

    # Per-call factorised noise (mirrors FactorisedNoisyLayer.sample_noise()).
    noise = (
        sample_layer_noise(kn1, input_dim, fc1_dims),
        sample_layer_noise(kn2, fc1_dims, fc2_dims),
        sample_layer_noise(kn3, fc2_dims, n_actions),
    )

    q_vals = dqn_forward(state, prepped, noise, n_actions=n_actions)
    jax.block_until_ready(q_vals)

    # Reference: exact FactorisedNoisyLayer training-mode math in plain JAX.
    def ref_layer(x, p, eps, relu):
        mu_w, sg_w, mu_b, sg_b = p
        ein, eout = eps
        w = sg_w * jnp.outer(eout, ein) + mu_w
        b = sg_b * eout + mu_b
        y = x @ w.T + b
        return jnp.maximum(y, 0.0) if relu else y

    ref = ref_layer(
        ref_layer(
            ref_layer(state, params[0], noise[0], True),
            params[1], noise[1], True),
        params[2], noise[2], False)

    assert q_vals.shape == (batch, n_actions)
    assert jnp.allclose(q_vals, ref, atol=1e-4, rtol=1e-4), (
        float(jnp.max(jnp.abs(q_vals - ref))))

    # TODO(synk): eval-mode (non-noisy) branch, Adam optimizer, and HuberLoss
    # are not part of the forward pass and are intentionally not implemented.
    print("KERNEL_OK")
</pallas_src>

<mosaic_0001>
module attributes {stable_mosaic.version = 11 : i64} {
  func.func @dqn_fused_kernel(%arg0: memref<8x128xf32, #tpu.memory_space<vmem>>, %arg1: memref<1x128xf32, #tpu.memory_space<vmem>>, %arg2: memref<2x128x128xf32, #tpu.memory_space<vmem>>, %arg3: memref<8x128xf32, #tpu.memory_space<vmem>>, %arg4: memref<2x128x128xf32, #tpu.memory_space<vmem>>, %arg5: memref<8x128xf32, #tpu.memory_space<vmem>>, %arg6: memref<2x128x128xf32, #tpu.memory_space<vmem>>, %arg7: memref<8x128xf32, #tpu.memory_space<vmem>>, %arg8: memref<8x128xf32, #tpu.memory_space<vmem>>) attributes {dimension_semantics = [], scalar_prefetch = 0 : i64, scratch_operands = 0 : i64, tpu.core_type = #tpu.core_type<tc>} {
    %c0 = arith.constant 0 : index
    %c0_0 = arith.constant 0 : index
    %0 = vector.load %arg0[%c0, %c0_0] : memref<8x128xf32, #tpu.memory_space<vmem>>, vector<8x128xf32>
    %c0_1 = arith.constant 0 : index
    %c0_2 = arith.constant 0 : index
    %1 = vector.load %arg1[%c0_1, %c0_2] : memref<1x128xf32, #tpu.memory_space<vmem>>, vector<1x128xf32>
    %c0_3 = arith.constant 0 : index
    %c0_4 = arith.constant 0 : index
    %c0_5 = arith.constant 0 : index
    %2 = vector.load %arg2[%c0_3, %c0_4, %c0_5] : memref<2x128x128xf32, #tpu.memory_space<vmem>>, vector<1x128x128xf32>
    %3 = vector.shape_cast %2 : vector<1x128x128xf32> to vector<128x128xf32>
    %c1 = arith.constant 1 : index
    %c0_6 = arith.constant 0 : index
    %c0_7 = arith.constant 0 : index
    %4 = vector.load %arg2[%c1, %c0_6, %c0_7] : memref<2x128x128xf32, #tpu.memory_space<vmem>>, vector<1x128x128xf32>
    %5 = vector.shape_cast %4 : vector<1x128x128xf32> to vector<128x128xf32>
    %c0_8 = arith.constant 0 : index
    %c0_9 = arith.constant 0 : index
    %6 = vector.load %arg3[%c0_8, %c0_9] : memref<8x128xf32, #tpu.memory_space<vmem>>, vector<1x128xf32>
    %c1_10 = arith.constant 1 : index
    %c0_11 = arith.constant 0 : index
    %7 = vector.load %arg3[%c1_10, %c0_11] : memref<8x128xf32, #tpu.memory_space<vmem>>, vector<1x128xf32>
    %c2 = arith.constant 2 : index
    %c0_12 = arith.constant 0 : index
    %8 = vector.load %arg3[%c2, %c0_12] : memref<8x128xf32, #tpu.memory_space<vmem>>, vector<1x128xf32>
    %cst = arith.constant dense<0.000000e+00> : vector<8x128xf32>
    %9 = tpu.matmul %0, %3, %cst {dimension_numbers = #tpu.dot_dimension_numbers<[1], [0], [0], [1], [0, 0, 1, 1], [], []>} : vector<8x128xf32>, vector<128x128xf32>, vector<8x128xf32> -> vector<8x128xf32>
    %10 = vector.broadcast %1 : vector<1x128xf32> to vector<8x128xf32>
    %11 = arith.mulf %0, %10 : vector<8x128xf32>
    %cst_13 = arith.constant dense<0.000000e+00> : vector<8x128xf32>
    %12 = tpu.matmul %11, %5, %cst_13 {dimension_numbers = #tpu.dot_dimension_numbers<[1], [0], [0], [1], [0, 0, 1, 1], [], []>} : vector<8x128xf32>, vector<128x128xf32>, vector<8x128xf32> -> vector<8x128xf32>
    %13 = vector.broadcast %6 : vector<1x128xf32> to vector<8x128xf32>
    %14 = arith.mulf %13, %12 : vector<8x128xf32>
    %15 = arith.addf %9, %14 : vector<8x128xf32>
    %16 = arith.mulf %8, %6 : vector<1x128xf32>
    %17 = arith.addf %16, %7 : vector<1x128xf32>
    %18 = vector.broadcast %17 : vector<1x128xf32> to vector<8x128xf32>
    %19 = arith.addf %15, %18 : vector<8x128xf32>
    %cst_14 = arith.constant 0.000000e+00 : f32
    %20 = vector.broadcast %cst_14 : f32 to vector<8x128xf32>
    %21 = arith.maximumf %19, %20 : vector<8x128xf32>
    %c3 = arith.constant 3 : index
    %c0_15 = arith.constant 0 : index
    %22 = vector.load %arg3[%c3, %c0_15] : memref<8x128xf32, #tpu.memory_space<vmem>>, vector<1x128xf32>
    %c0_16 = arith.constant 0 : index
    %c0_17 = arith.constant 0 : index
    %c0_18 = arith.constant 0 : index
    %23 = vector.load %arg4[%c0_16, %c0_17, %c0_18] : memref<2x128x128xf32, #tpu.memory_space<vmem>>, vector<1x128x128xf32>
    %24 = vector.shape_cast %23 : vector<1x128x128xf32> to vector<128x128xf32>
    %c1_19 = arith.constant 1 : index
    %c0_20 = arith.constant 0 : index
    %c0_21 = arith.constant 0 : index
    %25 = vector.load %arg4[%c1_19, %c0_20, %c0_21] : memref<2x128x128xf32, #tpu.memory_space<vmem>>, vector<1x128x128xf32>
    %26 = vector.shape_cast %25 : vector<1x128x128xf32> to vector<128x128xf32>
    %c0_22 = arith.constant 0 : index
    %c0_23 = arith.constant 0 : index
    %27 = vector.load %arg5[%c0_22, %c0_23] : memref<8x128xf32, #tpu.memory_space<vmem>>, vector<1x128xf32>
    %c1_24 = arith.constant 1 : index
    %c0_25 = arith.constant 0 : index
    %28 = vector.load %arg5[%c1_24, %c0_25] : memref<8x128xf32, #tpu.memory_space<vmem>>, vector<1x128xf32>
    %c2_26 = arith.constant 2 : index
    %c0_27 = arith.constant 0 : index
    %29 = vector.load %arg5[%c2_26, %c0_27] : memref<8x128xf32, #tpu.memory_space<vmem>>, vector<1x128xf32>
    %cst_28 = arith.constant dense<0.000000e+00> : vector<8x128xf32>
    %30 = tpu.matmul %21, %24, %cst_28 {dimension_numbers = #tpu.dot_dimension_numbers<[1], [0], [0], [1], [0, 0, 1, 1], [], []>} : vector<8x128xf32>, vector<128x128xf32>, vector<8x128xf32> -> vector<8x128xf32>
    %31 = vector.broadcast %22 : vector<1x128xf32> to vector<8x128xf32>
    %32 = arith.mulf %21, %31 : vector<8x128xf32>
    %cst_29 = arith.constant dense<0.000000e+00> : vector<8x128xf32>
    %33 = tpu.matmul %32, %26, %cst_29 {dimension_numbers = #tpu.dot_dimension_numbers<[1], [0], [0], [1], [0, 0, 1, 1], [], []>} : vector<8x128xf32>, vector<128x128xf32>, vector<8x128xf32> -> vector<8x128xf32>
    %34 = vector.broadcast %27 : vector<1x128xf32> to vector<8x128xf32>
    %35 = arith.mulf %34, %33 : vector<8x128xf32>
    %36 = arith.addf %30, %35 : vector<8x128xf32>
    %37 = arith.mulf %29, %27 : vector<1x128xf32>
    %38 = arith.addf %37, %28 : vector<1x128xf32>
    %39 = vector.broadcast %38 : vector<1x128xf32> to vector<8x128xf32>
    %40 = arith.addf %36, %39 : vector<8x128xf32>
    %cst_30 = arith.constant 0.000000e+00 : f32
    %41 = vector.broadcast %cst_30 : f32 to vector<8x128xf32>
    %42 = arith.maximumf %40, %41 : vector<8x128xf32>
    %c3_31 = arith.constant 3 : index
    %c0_32 = arith.constant 0 : index
    %43 = vector.load %arg5[%c3_31, %c0_32] : memref<8x128xf32, #tpu.memory_space<vmem>>, vector<1x128xf32>
    %c0_33 = arith.constant 0 : index
    %c0_34 = arith.constant 0 : index
    %c0_35 = arith.constant 0 : index
    %44 = vector.load %arg6[%c0_33, %c0_34, %c0_35] : memref<2x128x128xf32, #tpu.memory_space<vmem>>, vector<1x128x128xf32>
    %45 = vector.shape_cast %44 : vector<1x128x128xf32> to vector<128x128xf32>
    %c1_36 = arith.constant 1 : index
    %c0_37 = arith.constant 0 : index
    %c0_38 = arith.constant 0 : index
    %46 = vector.load %arg6[%c1_36, %c0_37, %c0_38] : memref<2x128x128xf32, #tpu.memory_space<vmem>>, vector<1x128x128xf32>
    %47 = vector.shape_cast %46 : vector<1x128x128xf32> to vector<128x128xf32>
    %c0_39 = arith.constant 0 : index
    %c0_40 = arith.constant 0 : index
    %48 = vector.load %arg7[%c0_39, %c0_40] : memref<8x128xf32, #tpu.memory_space<vmem>>, vector<1x128xf32>
    %c1_41 = arith.constant 1 : index
    %c0_42 = arith.constant 0 : index
    %49 = vector.load %arg7[%c1_41, %c0_42] : memref<8x128xf32, #tpu.memory_space<vmem>>, vector<1x128xf32>
    %c2_43 = arith.constant 2 : index
    %c0_44 = arith.constant 0 : index
    %50 = vector.load %arg7[%c2_43, %c0_44] : memref<8x128xf32, #tpu.memory_space<vmem>>, vector<1x128xf32>
    %cst_45 = arith.constant dense<0.000000e+00> : vector<8x128xf32>
    %51 = tpu.matmul %42, %45, %cst_45 {dimension_numbers = #tpu.dot_dimension_numbers<[1], [0], [0], [1], [0, 0, 1, 1], [], []>} : vector<8x128xf32>, vector<128x128xf32>, vector<8x128xf32> -> vector<8x128xf32>
    %52 = vector.broadcast %43 : vector<1x128xf32> to vector<8x128xf32>
    %53 = arith.mulf %42, %52 : vector<8x128xf32>
    %cst_46 = arith.constant dense<0.000000e+00> : vector<8x128xf32>
    %54 = tpu.matmul %53, %47, %cst_46 {dimension_numbers = #tpu.dot_dimension_numbers<[1], [0], [0], [1], [0, 0, 1, 1], [], []>} : vector<8x128xf32>, vector<128x128xf32>, vector<8x128xf32> -> vector<8x128xf32>
    %55 = vector.broadcast %48 : vector<1x128xf32> to vector<8x128xf32>
    %56 = arith.mulf %55, %54 : vector<8x128xf32>
    %57 = arith.addf %51, %56 : vector<8x128xf32>
    %58 = arith.mulf %50, %48 : vector<1x128xf32>
    %59 = arith.addf %58, %49 : vector<1x128xf32>
    %60 = vector.broadcast %59 : vector<1x128xf32> to vector<8x128xf32>
    %61 = arith.addf %57, %60 : vector<8x128xf32>
    %c0_47 = arith.constant 0 : index
    %c0_48 = arith.constant 0 : index
    %62 = vector.load %arg8[%c0_47, %c0_48] : memref<8x128xf32, #tpu.memory_space<vmem>>, vector<8x128xf32>
    tpu.vector_store %arg8[%c0_47, %c0_48], %61 {strides = array<i32>} : memref<8x128xf32, #tpu.memory_space<vmem>>, vector<8x128xf32>,
    return
  }
}

</mosaic_0001>

<bundles_post_ra>
// kernel: dqn_forward.1
= control target key start
LH: loop header
LB: loop body
LE: loop exit
PB: predicated region body
PF: predicated region fallthrough
CT: control target
= control target key end

     0   :  { %13 = vsyncpa [#allocation3], 0  ;;  %s1416_s0 = inlined_call_operand.vmem [shape: f32[8,128], index: 0, kind: input, shape index: {}]   ;;  %s1417_s1 = inlined_call_operand.vmem [shape: f32[1,128], index: 1, kind: input, shape index: {}]   ;;  %s1418_s2 = inlined_call_operand.hbm [shape: f32[2,128,128], index: 2, kind: input, shape index: {}]   ;;  %s1419_s3 = inlined_call_operand.vmem [shape: f32[8,128], index: 3, kind: input, shape index: {}]   ;;  %s1420_s4 = inlined_call_operand.hbm [shape: f32[2,128,128], index: 4, kind: input, shape index: {}]   ;;  %s1421_s5 = inlined_call_operand.vmem [shape: f32[8,128], index: 5, kind: input, shape index: {}]   ;;  %s1422_s6 = inlined_call_operand.hbm [shape: f32[2,128,128], index: 6, kind: input, shape index: {}]   ;;  %s1423_s7 = inlined_call_operand.vmem [shape: f32[8,128], index: 7, kind: input, shape index: {}]   ;;  %s1424_s8 = inlined_call_operand.vmem [shape: f32[8,128], index: 8, kind: output, shape index: {}]  }
   0x1   :  { %14 = vsyncpa [#allocation5], 0  ;;  %s1201_s27 = smov [#allocation4]   ;;  %s1202_s29 = smov [#allocation2]  }
   0x2   :  { %s38_s28 = sshll.u32 %s1201_s27, 4  ;;  %s24_s30 = sshll.u32 %s1202_s29, 4  ;;  %s39_s28 = int_to_ptr.vmem [resolvable:$true] %s38_s28  ;;  %s1254_s30 = int_to_ptr.vmem [resolvable:$true] %s24_s30 }
   0x3   :  { %s1131_s11 = scalar_lea.hbm %s1420_s4, 4096 }
   0x4   :  { %p1132_p0 = scmp.ne.s32.totalorder %s1420_s4, %s1131_s11  ;;  %p1135_p1 = scmp.lt.u32.totalorder %s1131_s11, %s1420_s4 }
   0x6   :  { %p1137_p2 = pnand %p1135_p1, %p1132_p0 }
   0x8   :  { %1140 = shalt.err (!%p1137_p2)
}
   0x9   :  { %s1141_s16 = scalar_lea.vmem %s39_s28, 4096  ;;  %p1146_p4 = scmp.lt.s32.totalorder %s39_s28, %s39_s28 }
   0xa   :  { %p1142_p3 = scmp.ne.s32.totalorder %s39_s28, %s1141_s16  ;;  %p1147_p5 = scmp.lt.s32.totalorder %s1141_s16, %s1141_s16 }
   0xc   :  { %p1148_p6 = por %p1147_p5, %p1146_p4 }
   0xe   :  { %p1149_p7 = pnand %p1148_p6, %p1142_p3 }
  0x10   :  { %1152 = shalt.err (!%p1149_p7)
}
  0x11   :  { %s1203_s17 = smov 128   ;;  %s1204_s18 = smov 8  }
  0x12   :  { %44 = dma.hbm_to_vmem [thread:$0]  %s1420_s4, 4096, %s39_s28, [#allocation5], %s1203_s17, %s1203_s17, %s1204_s18  }
  0x13   :  { %s1153_s23 = scalar_lea.hbm %s1418_s2, 4096 }
  0x14   :  { %p1154_p8 = scmp.ne.s32.totalorder %s1418_s2, %s1153_s23  ;;  %p1157_p9 = scmp.lt.u32.totalorder %s1153_s23, %s1418_s2 }
  0x16   :  { %p1159_p10 = pnand %p1157_p9, %p1154_p8 }
  0x18   :  { %1162 = shalt.err (!%p1159_p10)
}
  0x19   :  { %s1163_s29 = scalar_lea.vmem %s1254_s30, 4096  ;;  %p1168_p12 = scmp.lt.s32.totalorder %s1254_s30, %s1254_s30 }
  0x1a   :  { %p1164_p11 = scmp.ne.s32.totalorder %s1254_s30, %s1163_s29  ;;  %p1169_p13 = scmp.lt.s32.totalorder %s1163_s29, %s1163_s29 }
  0x1c   :  { %p1170_p0 = por %p1169_p13, %p1168_p12 }
  0x1e   :  { %p1171_p1 = pnand %p1170_p0, %p1164_p11 }
  0x20   :  { %1174 = shalt.err (!%p1171_p1)
}
  0x21   :  { %30 = dma.hbm_to_vmem [thread:$0]  %s1418_s2, 4096, %s1254_s30, [#allocation3], %s1203_s17, %s1203_s17, %s1204_s18  }
  0x22   :  { %s1205_s9 = smov [#allocation6]   ;;  %s1175_s13 = scalar_lea.hbm %s1422_s6, 4096 }
  0x23   :  { %s52_s10 = sshll.u32 %s1205_s9, 4  ;;  %p1176_p2 = scmp.ne.s32.totalorder %s1422_s6, %s1175_s13  ;;  %s53_s10 = int_to_ptr.vmem [resolvable:$true] %s52_s10 }
  0x24   :  { %p1179_p3 = scmp.lt.u32.totalorder %s1175_s13, %s1422_s6 }
  0x26   :  { %p1181_p4 = pnand %p1179_p3, %p1176_p2 }
  0x28   :  { %1184 = shalt.err (!%p1181_p4)
}
  0x29   :  { %s1185_s20 = scalar_lea.vmem %s53_s10, 4096  ;;  %p1190_p6 = scmp.lt.s32.totalorder %s53_s10, %s53_s10 }
  0x2a   :  { %p1186_p5 = scmp.ne.s32.totalorder %s53_s10, %s1185_s20  ;;  %p1191_p7 = scmp.lt.s32.totalorder %s1185_s20, %s1185_s20 }
  0x2c   :  { %p1192_p8 = por %p1191_p7, %p1190_p6 }
  0x2e   :  { %p1193_p9 = pnand %p1192_p8, %p1186_p5 }
  0x30   :  { %1196 = shalt.err (!%p1193_p9)
}
  0x31   :  { %58 = dma.hbm_to_vmem [thread:$0]  %s1422_s6, 4096, %s53_s10, [#allocation5], %s1203_s17, %s1203_s17, %s1204_s18  }
  0x32   :  { %1197 = dma.done.wait [#allocation3], 4096  }
  0x33   :  { %1198 = vsyncadd [#allocation3], 4294963200 }
  0x34   :  { %1199 = dma.done.wait [#allocation5], 8192  }
  0x35   :  { %1200 = vsyncadd [#allocation5], 4294959104  ;;  %v1206_v0 = vmov 0.0|0.0   ;;  %vm1207_vm0 = vmmov 0   ;;  %v1208_v1 = vmov 0.0   ;;  %v89_v2 = vld [vmem:[#allocation2 + $0x80] sm:$0xff] }
  0x36   :  { %979 = vmatprep.subr.bf16.mxu0 %v1206_v0  ;;  %1003 = vmatprep.subr.bf16.mxu1 %v1206_v0  ;;  %v90_v3 = vld [vmem:[#allocation2 + $0x88] sm:$0xff]  ;;  %v72_v4 = vld [vmem:[#allocation2] sm:$0xff]  ;;  %v91_v7 = vld [vmem:[#allocation2 + $0x90] sm:$0xff] }
  0x37   :  { %801 = vmatprep.mubr.msk.f32.mxu0 %vm1207_vm0, %v1208_v1  ;;  %836 = vmatprep.mubr.msk.f32.mxu1 %vm1207_vm0, %v1208_v1  ;;  %v980_v5 = vpack.c.bf16 %v90_v3, %v89_v2  ;;  %v73_v6 = vld [vmem:[#allocation2 + $0x8] sm:$0xff]  ;;  %v92_v8 = vld [vmem:[#allocation2 + $0x98] sm:$0xff]  ;;  %v74_v10 = vld [vmem:[#allocation2 + $0x10] sm:$0xff] }
  0x38   :  { %v1004_v9 = vpack.c.bf16 %v73_v6, %v72_v4  ;;  %v75_v11 = vld [vmem:[#allocation2 + $0x18] sm:$0xff]  ;;  %v983_v12 = vpack.c.bf16 %v92_v8, %v91_v7  ;;  %v93_v14 = vld [vmem:[#allocation2 + $0xa0] sm:$0xff]  ;;  %v94_v15 = vld [vmem:[#allocation2 + $0xa8] sm:$0xff] }
  0x39   :  { %981 = vmatpush3.bf16.msra.mxu0 %v980_v5  ;;  %v1007_v13 = vpack.c.bf16 %v75_v11, %v74_v10  ;;  %v76_v16 = vld [vmem:[#allocation2 + $0x20] sm:$0xff]  ;;  %v77_v17 = vld [vmem:[#allocation2 + $0x28] sm:$0xff]  ;;  %v986_v18 = vpack.c.bf16 %v94_v15, %v93_v14  ;;  %v95_v20 = vld [vmem:[#allocation2 + $0xb0] sm:$0xff] }
  0x3a   :  { %1005 = vmatpush3.bf16.msra.mxu1 %v1004_v9  ;;  %982 = vmatprep.subr.bf16.mxu0 %v1206_v0  ;;  %v1010_v19 = vpack.c.bf16 %v77_v17, %v76_v16  ;;  %v96_v21 = vld [vmem:[#allocation2 + $0xb8] sm:$0xff]  ;;  %v78_v22 = vld [vmem:[#allocation2 + $0x30] sm:$0xff]  ;;  %v97_v26 = vld [vmem:[#allocation2 + $0xc0] sm:$0xff] }
  0x3b   :  { %1006 = vmatprep.subr.bf16.mxu1 %v1206_v0  ;;  %v79_v23 = vld [vmem:[#allocation2 + $0x38] sm:$0xff]  ;;  %v989_v24 = vpack.c.bf16 %v96_v21, %v95_v20  ;;  %v98_v27 = vld [vmem:[#allocation2 + $0xc8] sm:$0xff]  ;;  %v80_v28 = vld [vmem:[#allocation2 + $0x40] sm:$0xff] }
  0x3c   :  { %v1013_v25 = vpack.c.bf16 %v79_v23, %v78_v22  ;;  %v81_v29 = vld [vmem:[#allocation2 + $0x48] sm:$0xff]  ;;  %v992_v30 = vpack.c.bf16 %v98_v27, %v97_v26  ;;  %v99_v32 = vld [vmem:[#allocation2 + $0xd0] sm:$0xff]  ;;  %v100_v33 = vld [vmem:[#allocation2 + $0xd8] sm:$0xff] }
  0x3d   :  { %984 = vmatpush3.bf16.msra.mxu0 %v983_v12  ;;  %v1016_v31 = vpack.c.bf16 %v81_v29, %v80_v28  ;;  %v82_v34 = vld [vmem:[#allocation2 + $0x50] sm:$0xff]  ;;  %v83_v35 = vld [vmem:[#allocation2 + $0x58] sm:$0xff]  ;;  %v995_v36 = vpack.c.bf16 %v100_v33, %v99_v32  ;;  %v101_v38 = vld [vmem:[#allocation2 + $0xe0] sm:$0xff] }
  0x3e   :  { %1008 = vmatpush3.bf16.msra.mxu1 %v1007_v13  ;;  %985 = vmatprep.subr.bf16.mxu0 %v1206_v0  ;;  %v1019_v37 = vpack.c.bf16 %v83_v35, %v82_v34  ;;  %v102_v39 = vld [vmem:[#allocation2 + $0xe8] sm:$0xff]  ;;  %v84_v40 = vld [vmem:[#allocation2 + $0x60] sm:$0xff]  ;;  %v103_v44 = vld [vmem:[#allocation2 + $0xf0] sm:$0xff] }
  0x3f   :  { %1009 = vmatprep.subr.bf16.mxu1 %v1206_v0  ;;  %v85_v41 = vld [vmem:[#allocation2 + $0x68] sm:$0xff]  ;;  %v998_v42 = vpack.c.bf16 %v102_v39, %v101_v38  ;;  %v104_v45 = vld [vmem:[#allocation2 + $0xf8] sm:$0xff]  ;;  %v86_v46 = vld [vmem:[#allocation2 + $0x70] sm:$0xff]  ;;  %v185_v39 = vlaneseq }
  0x40   :  { %v1022_v43 = vpack.c.bf16 %v85_v41, %v84_v40  ;;  %v87_v47 = vld [vmem:[#allocation2 + $0x78] sm:$0xff]  ;;  %v1001_v48 = vpack.c.bf16 %v104_v45, %v103_v44  ;;  %v70_v49 = vld [vmem:[%s1416_s0] sm:$0xff]  ;;  %v287_v53 = vld [vmem:[#allocation4 + $0x88] sm:$0xff] }
  0x41   :  { %987 = vmatpush3.bf16.msra.mxu0 %v986_v18  ;;  %v664_v50 = vld [vmem:[%s1417_s1] ss:$0 sm:$0xff]  ;;  %v1025_v51 = vpack.c.bf16 %v87_v47, %v86_v46  ;;  %v270_v55 = vld [vmem:[#allocation4 + $0x8] sm:$0xff]  ;;  %v288_v59 = vld [vmem:[#allocation4 + $0x90] sm:$0xff]  ;;  %v186_v40 = vshrl.u32 %v185_v39, 7 }
  0x42   :  { %1011 = vmatpush3.bf16.msra.mxu1 %v1010_v19  ;;  %988 = vmatprep.subr.bf16.mxu0 %v1206_v0  ;;  %v286_v52 = vld [vmem:[#allocation4 + $0x80] sm:$0xff]  ;;  %v114_v56 = vmul.f32 %v664_v50, %v70_v49  ;;  %v289_v60 = vld [vmem:[#allocation4 + $0x98] sm:$0xff]  ;;  %v271_v61 = vld [vmem:[#allocation4 + $0x10] sm:$0xff] }
  0x43   :  { %1012 = vmatprep.subr.bf16.mxu1 %v1206_v0  ;;  %v269_v54 = vld [vmem:[#allocation4] sm:$0xff]  ;;  %v1028_v57 = vpack.c.bf16 %v287_v53, %v286_v52  ;;  %v272_v62 = vld [vmem:[#allocation4 + $0x18] sm:$0xff]  ;;  %v1031_v63 = vpack.c.bf16 %v289_v60, %v288_v59  ;;  %v291_v4 = vld [vmem:[#allocation4 + $0xa8] sm:$0xff] }
  0x44   :  { %v1052_v58 = vpack.c.bf16 %v270_v55, %v269_v54  ;;  %v1055_v2 = vpack.c.bf16 %v272_v62, %v271_v61  ;;  %v290_v3 = vld [vmem:[#allocation4 + $0xa0] sm:$0xff]  ;;  %v274_v6 = vld [vmem:[#allocation4 + $0x28] sm:$0xff]  ;;  %v292_v9 = vld [vmem:[#allocation4 + $0xb0] sm:$0xff] }
  0x45   :  { %990 = vmatpush3.bf16.msra.mxu0 %v989_v24  ;;  %v273_v5 = vld [vmem:[#allocation4 + $0x20] sm:$0xff]  ;;  %v1034_v7 = vpack.c.bf16 %v291_v4, %v290_v3  ;;  %v293_v10 = vld [vmem:[#allocation4 + $0xb8] sm:$0xff]  ;;  %v275_v11 = vld [vmem:[#allocation4 + $0x30] sm:$0xff] }
  0x46   :  { %1014 = vmatpush3.bf16.msra.mxu1 %v1013_v25  ;;  %991 = vmatprep.subr.bf16.mxu0 %v1206_v0  ;;  %v1058_v8 = vpack.c.bf16 %v274_v6, %v273_v5  ;;  %v276_v12 = vld [vmem:[#allocation4 + $0x38] sm:$0xff]  ;;  %v1037_v13 = vpack.c.bf16 %v293_v10, %v292_v9  ;;  %v294_v15 = vld [vmem:[#allocation4 + $0xc0] sm:$0xff]  ;;  %v295_v16 = vld [vmem:[#allocation4 + $0xc8] sm:$0xff] }
  0x47   :  { %1015 = vmatprep.subr.bf16.mxu1 %v1206_v0  ;;  %v1061_v14 = vpack.c.bf16 %v276_v12, %v275_v11  ;;  %v277_v17 = vld [vmem:[#allocation4 + $0x40] sm:$0xff]  ;;  %v278_v18 = vld [vmem:[#allocation4 + $0x48] sm:$0xff]  ;;  %v1040_v19 = vpack.c.bf16 %v295_v16, %v294_v15  ;;  %v279_v21 = vld [vmem:[#allocation4 + $0x50] sm:$0xff] }
  0x48   :  { %v1064_v20 = vpack.c.bf16 %v278_v18, %v277_v17  ;;  %v280_v22 = vld [vmem:[#allocation4 + $0x58] sm:$0xff]  ;;  %v296_v24 = vld [vmem:[#allocation4 + $0xd0] sm:$0xff]  ;;  %v281_v27 = vld [vmem:[#allocation4 + $0x60] sm:$0xff] }
  0x49   :  { %993 = vmatpush3.bf16.msra.mxu0 %v992_v30  ;;  %v1067_v23 = vpack.c.bf16 %v280_v22, %v279_v21  ;;  %v297_v25 = vld [vmem:[#allocation4 + $0xd8] sm:$0xff]  ;;  %v282_v28 = vld [vmem:[#allocation4 + $0x68] sm:$0xff]  ;;  %v298_v30 = vld [vmem:[#allocation4 + $0xe0] sm:$0xff] }
  0x4a   :  { %1017 = vmatpush3.bf16.msra.mxu1 %v1016_v31  ;;  %994 = vmatprep.subr.bf16.mxu0 %v1206_v0  ;;  %v1043_v26 = vpack.c.bf16 %v297_v25, %v296_v24  ;;  %v1070_v29 = vpack.c.bf16 %v282_v28, %v281_v27  ;;  %v299_v31 = vld [vmem:[#allocation4 + $0xe8] sm:$0xff]  ;;  %v283_v33 = vld [vmem:[#allocation4 + $0x70] sm:$0xff]  ;;  %v284_v34 = vld [vmem:[#allocation4 + $0x78] sm:$0xff] }
  0x4b   :  { %1018 = vmatprep.subr.bf16.mxu1 %v1206_v0  ;;  %v1046_v32 = vpack.c.bf16 %v299_v31, %v298_v30  ;;  %v1073_v35 = vpack.c.bf16 %v284_v34, %v283_v33  ;;  %v105_v41 = vld [vmem:[%s1419_s3] sm:$0x1]  ;;  %v106_v45 = vld [vmem:[%s1419_s3 + $0x1] sm:$0x1]  ;;  %v482_v59 = vld [vmem:[#allocation6 + $0x88] sm:$0xff] }
  0x4c   :  { %v464_v55 = vld [vmem:[#allocation6] sm:$0xff]  ;;  %v483_v5 = vld [vmem:[#allocation6 + $0x90] sm:$0xff]  ;;  %v484_v6 = vld [vmem:[#allocation6 + $0x98] sm:$0xff] }
  0x4d   :  { %996 = vmatpush3.bf16.msra.mxu0 %v995_v36  ;;  %v300_v36 = vld [vmem:[#allocation4 + $0xf0] sm:$0xff]  ;;  %v665_v60 = vld [vmem:[%s1419_s3 + $0x3] ss:$0 sm:$0xff]  ;;  %v469_v9 = vld [vmem:[#allocation6 + $0x28] sm:$0xff]  ;;  %v1079_v10 = vpack.c.bf16 %v484_v6, %v483_v5 }
  0x4e   :  { %1020 = vmatpush3.bf16.msra.mxu1 %v1019_v37  ;;  %997 = vmatprep.subr.bf16.mxu0 %v1206_v0  ;;  %v301_v37 = vld [vmem:[#allocation4 + $0xf8] sm:$0xff]  ;;  %v485_v11 = vld [vmem:[#allocation6 + $0xa0] sm:$0xff]  ;;  %v486_v12 = vld [vmem:[#allocation6 + $0xa8] sm:$0xff] }
  0x4f   :  { %1021 = vmatprep.subr.bf16.mxu1 %v1206_v0  ;;  %v1049_v38 = vpack.c.bf16 %v301_v37, %v300_v36  ;;  %v471_v15 = vld [vmem:[#allocation6 + $0x38] sm:$0xff]  ;;  %v1082_v16 = vpack.c.bf16 %v486_v12, %v485_v11  ;;  %v487_v17 = vld [vmem:[#allocation6 + $0xb0] sm:$0xff]  ;;  %v489_v22 = vld [vmem:[#allocation6 + $0xc0] sm:$0xff] }
  0x50   :  { %v488_v18 = vld [vmem:[#allocation6 + $0xb8] sm:$0xff]  ;;  %v477_v33 = vld [vmem:[#allocation6 + $0x68] sm:$0xff] }
  0x51   :  { %999 = vmatpush3.bf16.msra.mxu0 %v998_v42  ;;  %v107_v42 = vld [vmem:[%s1419_s3 + $0x2] sm:$0x1]  ;;  %v1085_v21 = vpack.c.bf16 %v488_v18, %v487_v17  ;;  %v475_v27 = vld [vmem:[#allocation6 + $0x58] sm:$0xff]  ;;  %v494_v36 = vld [vmem:[#allocation6 + $0xe8] sm:$0xff] }
  0x52   :  { %1023 = vmatpush3.bf16.msra.mxu1 %v1022_v43  ;;  %1000 = vmatprep.subr.bf16.mxu0 %v1206_v0  ;;  %v1360_v43 = vsub.s32 0, %v186_v40  ;;  %v260_v44 = vmul.f32 %v107_v42, %v105_v41  ;;  %v492_v30 = vld [vmem:[#allocation6 + $0xd8] sm:$0xff] }
  0x53   :  { %1024 = vmatprep.subr.bf16.mxu1 %v1206_v0  ;;  %v479_v39 = vld [vmem:[#allocation6 + $0x78] sm:$0xff] }
  0x54   :  { %v188_v46 = vrot.slane %v105_v41, %v1360_v43  ;;  %v261_v47 = vadd.f32 %v260_v44, %v106_v45  ;;  %v495_v41 = vld [vmem:[#allocation6 + $0xf0] sm:$0xff]  ;;  %v496_v42 = vld [vmem:[#allocation6 + $0xf8] sm:$0xff]  ;;  %v302_v45 = vld [vmem:[%s1421_s5] sm:$0x1] }
  0x55   :  { %1002 = vmatpush3.bf16.msra.mxu0 %v1001_v48  ;;  %v1097_v44 = vpack.c.bf16 %v496_v42, %v495_v41 }
  0x56   :  { %1026 = vmatpush3.bf16.msra.mxu1 %v1025_v51  ;;  %1027 = vmatprep.subr.bf16.mxu0 %v1206_v0  ;;  %v265_v52 = vrot.slane %v261_v47, %v1360_v43 }
  0x57   :  { %1051 = vmatprep.subr.bf16.mxu1 %v1206_v0 }
  0x58   :  { %802 = vmatmul.mubr.f32.vlgmr.msra.gmra.mrb[0].mxu0 %v114_v56  ;;  %v465_v56 = vld [vmem:[#allocation6 + $0x8] sm:$0xff] }
  0x59   :  { %837 = vmatmul.mubr.f32.vlgmr.msra.gmra.mrb[0].mxu1 %v70_v49  ;;  %1029 = vmatpush3.bf16.msra.mxu0 %v1028_v57  ;;  %v1100_v61 = vpack.c.bf16 %v465_v56, %v464_v55 }
  0x5a   :  { %1053 = vmatpush3.bf16.msra.mxu1 %v1052_v58  ;;  %1030 = vmatprep.subr.bf16.mxu0 %v1206_v0  ;;  %v481_v58 = vld [vmem:[#allocation6 + $0x80] sm:$0xff] }
  0x5b   :  { %1054 = vmatprep.subr.bf16.mxu1 %v1206_v0  ;;  %906 = vmatprep.mubr.msk.f32.mxu1 %vm1207_vm0, %v1208_v1  ;;  %v1076_v3 = vpack.c.bf16 %v482_v59, %v481_v58  ;;  %v666_v58 = vld [vmem:[%s1421_s5 + $0x3] ss:$0 sm:$0xff] }
  0x5c   :  { %871 = vmatprep.mubr.msk.f32.mxu0 %vm1207_vm0, %v1208_v1 }
  0x5d   :  { %1032 = vmatpush3.bf16.msra.mxu0 %v1031_v63  ;;  %v466_v63 = vld [vmem:[#allocation6 + $0x10] sm:$0xff] }
  0x5e   :  { %1056 = vmatpush3.bf16.msra.mxu1 %v1055_v2  ;;  %1033 = vmatprep.subr.bf16.mxu0 %v1206_v0  ;;  %v467_v2 = vld [vmem:[#allocation6 + $0x18] sm:$0xff] }
  0x5f   :  { %1057 = vmatprep.subr.bf16.mxu1 %v1206_v0 }
  0x61   :  { %1035 = vmatpush3.bf16.msra.mxu0 %v1034_v7  ;;  %v1103_v7 = vpack.c.bf16 %v467_v2, %v466_v63  ;;  %v498_v2 = vld [vmem:[%s1423_s7 + $0x1] sm:$0x1] }
  0x62   :  { %1059 = vmatpush3.bf16.msra.mxu1 %v1058_v8  ;;  %1036 = vmatprep.subr.bf16.mxu0 %v1206_v0  ;;  %v468_v8 = vld [vmem:[#allocation6 + $0x20] sm:$0xff] }
  0x63   :  { %1060 = vmatprep.subr.bf16.mxu1 %v1206_v0 }
  0x65   :  { %1038 = vmatpush3.bf16.msra.mxu0 %v1037_v13  ;;  %v1106_v13 = vpack.c.bf16 %v469_v9, %v468_v8 }
  0x66   :  { %1062 = vmatpush3.bf16.msra.mxu1 %v1061_v14  ;;  %1039 = vmatprep.subr.bf16.mxu0 %v1206_v0  ;;  %v470_v14 = vld [vmem:[#allocation6 + $0x30] sm:$0xff] }
  0x67   :  { %1063 = vmatprep.subr.bf16.mxu1 %v1206_v0 }
  0x69   :  { %1041 = vmatpush3.bf16.msra.mxu0 %v1040_v19  ;;  %v1109_v19 = vpack.c.bf16 %v471_v15, %v470_v14 }
  0x6a   :  { %1065 = vmatpush3.bf16.msra.mxu1 %v1064_v20  ;;  %1042 = vmatprep.subr.bf16.mxu0 %v1206_v0  ;;  %v473_v20 = vld [vmem:[#allocation6 + $0x48] sm:$0xff] }
  0x6b   :  { %1066 = vmatprep.subr.bf16.mxu1 %v1206_v0 }
  0x6d   :  { %1044 = vmatpush3.bf16.msra.mxu0 %v1043_v26  ;;  %v474_v26 = vld [vmem:[#allocation6 + $0x50] sm:$0xff] }
  0x6e   :  { %1068 = vmatpush3.bf16.msra.mxu1 %v1067_v23  ;;  %1045 = vmatprep.subr.bf16.mxu0 %v1206_v0  ;;  %v490_v23 = vld [vmem:[#allocation6 + $0xc8] sm:$0xff]  ;;  %v1115_v28 = vpack.c.bf16 %v475_v27, %v474_v26 }
  0x6f   :  { %1069 = vmatprep.subr.bf16.mxu1 %v1206_v0  ;;  %v1088_v25 = vpack.c.bf16 %v490_v23, %v489_v22 }
  0x71   :  { %1047 = vmatpush3.bf16.msra.mxu0 %v1046_v32  ;;  %v476_v32 = vld [vmem:[#allocation6 + $0x60] sm:$0xff] }
  0x72   :  { %1071 = vmatpush3.bf16.msra.mxu1 %v1070_v29  ;;  %1048 = vmatprep.subr.bf16.mxu0 %v1206_v0  ;;  %v491_v29 = vld [vmem:[#allocation6 + $0xd0] sm:$0xff]  ;;  %v1118_v34 = vpack.c.bf16 %v477_v33, %v476_v32 }
  0x73   :  { %1072 = vmatprep.subr.bf16.mxu1 %v1206_v0  ;;  %v1091_v31 = vpack.c.bf16 %v492_v30, %v491_v29 }
  0x75   :  { %1050 = vmatpush3.bf16.msra.mxu0 %v1049_v38  ;;  %v478_v38 = vld [vmem:[#allocation6 + $0x70] sm:$0xff] }
  0x76   :  { %1074 = vmatpush3.bf16.msra.mxu1 %v1073_v35  ;;  %1075 = vmatprep.subr.bf16.mxu0 %v1206_v0  ;;  %v493_v35 = vld [vmem:[#allocation6 + $0xe0] sm:$0xff]  ;;  %v1121_v40 = vpack.c.bf16 %v479_v39, %v478_v38 }
  0x77   :  { %1099 = vmatprep.subr.bf16.mxu1 %v1206_v0  ;;  %v1094_v37 = vpack.c.bf16 %v494_v36, %v493_v35 }
 0x12b   :  { %v181_v48 = vpop.f32.mrb[0].mxu0 }
 0x12c   :  { %v189_v49 = vmul.f32 %v188_v46, %v181_v48  ;;  %v803_v50 = vpop.f32.mrb[1].mxu0  ;;  %v256_v51 = vpop.f32.mrb[0].mxu1  ;;  %v304_v46 = vld [vmem:[%s1421_s5 + $0x2] sm:$0x1]  ;;  %v303_v48 = vld [vmem:[%s1421_s5 + $0x1] sm:$0x1] }
 0x12d   :  { %v838_v53 = vpop.f32.mrb[1].mxu1  ;;  %v455_v47 = vmul.f32 %v304_v46, %v302_v45 }
 0x12e   :  { %v257_v54 = vadd.f32 %v256_v51, %v189_v49 }
 0x12f   :  { %v456_v49 = vadd.f32 %v455_v47, %v303_v48 }
 0x130   :  { %v266_v57 = vadd.f32 %v265_v52, %v257_v54 }
 0x131   :  { %v460_v54 = vrot.slane %v456_v49, %v1360_v43 }
 0x132   :  { %v267_v62 = vmax.f32 %v266_v57, 0.0 }
 0x134   :  { %v309_v4 = vmul.f32 %v665_v60, %v267_v62  ;;  %907 = vmatmul.mubr.f32.vlgmr.msra.gmra.mrb[2].mxu1 %v267_v62  ;;  %v499_v62 = vld [vmem:[%s1423_s7 + $0x2] sm:$0x1] }
 0x135   :  { %1101 = vmatpush3.bf16.msra.mxu1 %v1100_v61  ;;  %976 = vmatprep.mubr.msk.f32.mxu1 %vm1207_vm0, %v1208_v1  ;;  %v497_v61 = vld [vmem:[%s1423_s7] sm:$0x1] }
 0x136   :  { %872 = vmatmul.mubr.f32.vlgmr.msra.gmra.mrb[2].mxu0 %v309_v4  ;;  %1102 = vmatprep.subr.bf16.mxu1 %v1206_v0  ;;  %v650_v63 = vmul.f32 %v499_v62, %v497_v61 }
 0x137   :  { %1077 = vmatpush3.bf16.msra.mxu0 %v1076_v3  ;;  %941 = vmatprep.mubr.msk.f32.mxu0 %vm1207_vm0, %v1208_v1  ;;  %v472_v1 = vld [vmem:[#allocation6 + $0x40] sm:$0xff]  ;;  %v578_v3 = vrot.slane %v497_v61, %v1360_v43 }
 0x138   :  { %1078 = vmatprep.subr.bf16.mxu0 %v1206_v0  ;;  %v1112_v24 = vpack.c.bf16 %v473_v20, %v472_v1  ;;  %v651_v4 = vadd.f32 %v650_v63, %v498_v2 }
 0x139   :  { %1104 = vmatpush3.bf16.msra.mxu1 %v1103_v7 }
 0x13a   :  { %1105 = vmatprep.subr.bf16.mxu1 %v1206_v0  ;;  %v655_v9 = vrot.slane %v651_v4, %v1360_v43 }
 0x13b   :  { %1080 = vmatpush3.bf16.msra.mxu0 %v1079_v10 }
 0x13c   :  { %1081 = vmatprep.subr.bf16.mxu0 %v1206_v0 }
 0x13d   :  { %1107 = vmatpush3.bf16.msra.mxu1 %v1106_v13 }
 0x13e   :  { %1108 = vmatprep.subr.bf16.mxu1 %v1206_v0 }
 0x13f   :  { %1083 = vmatpush3.bf16.msra.mxu0 %v1082_v16 }
 0x140   :  { %1084 = vmatprep.subr.bf16.mxu0 %v1206_v0 }
 0x141   :  { %1110 = vmatpush3.bf16.msra.mxu1 %v1109_v19 }
 0x142   :  { %1111 = vmatprep.subr.bf16.mxu1 %v1206_v0 }
 0x143   :  { %1086 = vmatpush3.bf16.msra.mxu0 %v1085_v21 }
 0x144   :  { %1087 = vmatprep.subr.bf16.mxu0 %v1206_v0 }
 0x145   :  { %1113 = vmatpush3.bf16.msra.mxu1 %v1112_v24 }
 0x146   :  { %1114 = vmatprep.subr.bf16.mxu1 %v1206_v0 }
 0x147   :  { %1089 = vmatpush3.bf16.msra.mxu0 %v1088_v25 }
 0x148   :  { %1090 = vmatprep.subr.bf16.mxu0 %v1206_v0 }
 0x149   :  { %1116 = vmatpush3.bf16.msra.mxu1 %v1115_v28 }
 0x14a   :  { %1117 = vmatprep.subr.bf16.mxu1 %v1206_v0 }
 0x14b   :  { %1092 = vmatpush3.bf16.msra.mxu0 %v1091_v31 }
 0x14c   :  { %1093 = vmatprep.subr.bf16.mxu0 %v1206_v0 }
 0x14d   :  { %1119 = vmatpush3.bf16.msra.mxu1 %v1118_v34 }
 0x14e   :  { %1120 = vmatprep.subr.bf16.mxu1 %v1206_v0 }
 0x14f   :  { %1095 = vmatpush3.bf16.msra.mxu0 %v1094_v37 }
 0x150   :  { %1096 = vmatprep.subr.bf16.mxu0 %v1206_v0  ;;  %v383_v0 = vrot.slane %v302_v45, %v1360_v43 }
 0x151   :  { %1122 = vmatpush3.bf16.msra.mxu1 %v1121_v40 }
 0x153   :  { %1098 = vmatpush3.bf16.msra.mxu0 %v1097_v44 }
 0x207   :  { %v451_v50 = vpop.f32.mrb[2].mxu1 }
 0x208   :  { %v908_v51 = vpop.f32.mrb[3].mxu1 }
 0x209   :  { %v376_v52 = vpop.f32.mrb[2].mxu0 }
 0x20a   :  { %v384_v53 = vmul.f32 %v383_v0, %v376_v52  ;;  %v873_v55 = vpop.f32.mrb[3].mxu0 }
 0x20c   :  { %v452_v56 = vadd.f32 %v451_v50, %v384_v53 }
 0x20e   :  { %v461_v57 = vadd.f32 %v460_v54, %v452_v56 }
 0x210   :  { %v462_v59 = vmax.f32 %v461_v57, 0.0 }
 0x212   :  { %v504_v60 = vmul.f32 %v666_v58, %v462_v59  ;;  %977 = vmatmul.mubr.f32.vlgmr.msra.gmra.mrb[4].mxu1 %v462_v59 }
 0x214   :  { %942 = vmatmul.mubr.f32.vlgmr.msra.gmra.mrb[4].mxu0 %v504_v60 }
 0x2e5   :  { %v646_v5 = vpop.f32.mrb[4].mxu1 }
 0x2e6   :  { %v978_v6 = vpop.f32.mrb[5].mxu1 }
 0x2e7   :  { %v571_v7 = vpop.f32.mrb[4].mxu0 }
 0x2e8   :  { %v579_v8 = vmul.f32 %v578_v3, %v571_v7  ;;  %v943_v10 = vpop.f32.mrb[5].mxu0 }
 0x2ea   :  { %v647_v11 = vadd.f32 %v646_v5, %v579_v8 }
 0x2ec   :  { %v656_v12 = vadd.f32 %v655_v9, %v647_v11 }
 0x2ee   :  { %657 = vst [vmem:[%s1424_s8] sm:$0xff] %v656_v12 }
 0x2ef   :  { %662 = vsyncpa [#allocation3], 1 }
 0x2f0   :  { %663 = vsyncpa [#allocation5], 1 }

</bundles_post_ra>
